<compile_context>
chip_gen: v5e
topology: v5e:2x2
jax: 0.10.0
libtpu: 0.0.40
codegen_flags: <defaults>
</compile_context>

<pallas_src>
import jax
import jax.numpy as jnp
from jax.experimental import pallas as pl
from jax.experimental.pallas import tpu as pltpu

BN_EPS = 1e-3  # matches nn.BatchNorm1d(out_channels, eps=0.001)


def _round_up(x, m):
    return ((x + m - 1) // m) * m


def _vmem_capacity_bytes():
    try:
        return int(pltpu.get_tpu_info().vmem_capacity_bytes)
    except Exception:
        return 128 << 20  # conservative default (v5e/v6e physical)


def _vmem_footprint(n, tk, tn):
    x_bytes = 2 * n * tk * 2       # bf16 input, double-buffered
    w_bytes = 2 * tk * tn * 2      # bf16 weight tile, double-buffered
    gb_bytes = 2 * 2 * tn * 4      # f32 gamma/beta, double-buffered (tiny)
    out_bytes = 2 * n * tn * 4     # f32 output block, double-buffered
    return x_bytes + w_bytes + gb_bytes + out_bytes


def _divisors_desc(total, cap=None):
    cands = [d for d in range(128, total + 1, 128) if total % d == 0]
    if cap is not None:
        cands = [d for d in cands if d <= cap] or [128]
    return sorted(set(cands), reverse=True)


def _select_tiles(n, k_pad, c_pad, vmem_budget):
    # Keep >=2 tiles along the parallel C_out axis when possible (v7x dual-TC).
    tn_cap = c_pad // 2 if c_pad >= 256 else c_pad
    tn_cands = _divisors_desc(c_pad, cap=max(tn_cap, 128))
    tk_cands = _divisors_desc(k_pad)  # biggest first -> tk == k_pad collapses reduction

    # Prefer growing tn (halves x re-streaming) over tk; within a tn, prefer the
    # largest tk that fits (fewer grid steps, contiguous x DMA).
    for tn in tn_cands:
        for tk in tk_cands:
            if _vmem_footprint(n, tk, tn) <= vmem_budget:
                return tk, tn
    return 128, 128  # last resort; very large N may still not fit (see TODO above)


def fc_bn_relu_kernel(x_ref, w_ref, gb_ref, o_ref):
    # x_ref:  (N, tk)   bf16 input slab (full batch, K-tile)
    # w_ref:  (tk, tn)  bf16 weight tile, already transposed to (C_in, C_out)
    # gb_ref: (2, tn)   f32: row 0 = BN gamma, row 1 = BN beta
    # o_ref:  (N, tn)   f32 output block; resident along k -> used as the accumulator
    k = pl.program_id(1)

    @pl.when(k == 0)
    def _():
        o_ref[...] = jnp.zeros_like(o_ref)

    # Linear partial product on the MXU (bf16 operands, f32 accumulation).
    o_ref[...] += jnp.dot(x_ref[...], w_ref[...], preferred_element_type=jnp.float32)

    @pl.when(k == pl.num_programs(1) - 1)
    def _():
        y = o_ref[...]
        inv_n = 1.0 / y.shape[0]

        # Training-mode BatchNorm1d stats (per output channel) in one sweep.
        s1 = jnp.sum(y, axis=0, keepdims=True)
        s2 = jnp.sum(y * y, axis=0, keepdims=True)
        mean = s1 * inv_n
        var = jnp.maximum(s2 * inv_n - mean * mean, 0.0)  # guard fp cancellation

        gamma = gb_ref[0:1, :]
        beta = gb_ref[1:2, :]
        scale = gamma * jax.lax.rsqrt(var + BN_EPS)
        shift = beta - mean * scale

        # Fused normalize + affine + ReLU (single FMA pass).
        o_ref[...] = jnp.maximum(y * scale + shift, 0.0).astype(o_ref.dtype)


def basic_fc_bn(x, w, b, gamma, beta):
    """x: (N, C_in); w: (C_out, C_in) PyTorch Linear layout; b/gamma/beta: (C_out,).

    The Linear bias `b` is accepted for API parity but dropped: training-mode BN
    subtracts the per-channel batch mean, which cancels it exactly.
    """
    del b
    N, C_in = x.shape
    C_out = w.shape[0]

    k_pad = _round_up(C_in, 128)
    c_pad = _round_up(C_out, 128)

    vmem_cap = _vmem_capacity_bytes()
    budget = int(vmem_cap * 0.7)
    tk, tn = _select_tiles(N, k_pad, c_pad, budget)

    # One-time wrapper transpose to (C_in, C_out); zero-pad only when needed.
    w_t = w.T
    if k_pad != C_in or c_pad != C_out:
        w_t = jnp.pad(w_t, ((0, k_pad - C_in), (0, c_pad - C_out)))
    x_p = x if k_pad == C_in else jnp.pad(x, ((0, 0), (0, k_pad - C_in)))

    # bf16 MXU operands (f32 accumulate happens inside the kernel).
    x_p = x_p.astype(jnp.bfloat16)
    w_t = w_t.astype(jnp.bfloat16)

    # gamma/beta merged into one (2, c_pad) f32 array (single small DMA per j-tile).
    gb = jnp.stack([gamma, beta], axis=0).astype(jnp.float32)
    if c_pad != C_out:
        # Zero-padded gamma/beta => padded channels come out exactly 0 after BN+ReLU.
        gb = jnp.pad(gb, ((0, 0), (0, c_pad - C_out)))

    grid = (c_pad // tn, k_pad // tk)  # (C_out tiles [parallel], C_in tiles [reduction])

    footprint = _vmem_footprint(N, tk, tn)
    vmem_limit = max(32 << 20, min(int(vmem_cap * 0.9), footprint + (8 << 20)))

    out_p = pl.pallas_call(
        fc_bn_relu_kernel,
        out_shape=jax.ShapeDtypeStruct((N, c_pad), jnp.float32),
        grid_spec=pltpu.PrefetchScalarGridSpec(
            num_scalar_prefetch=0,
            grid=grid,
            in_specs=[
                pl.BlockSpec((N, tk), lambda j, k: (0, k)),   # x: full batch, K-tile
                pl.BlockSpec((tk, tn), lambda j, k: (k, j)),  # w^T tile (C_in, C_out)
                pl.BlockSpec((2, tn), lambda j, k: (0, j)),   # [gamma; beta]
            ],
            out_specs=pl.BlockSpec((N, tn), lambda j, k: (0, j)),
        ),
        compiler_params=pltpu.CompilerParams(
            dimension_semantics=("parallel", "arbitrary"),
            vmem_limit_bytes=vmem_limit,
        ),
    )(x_p, w_t, gb)

    return out_p if c_pad == C_out else out_p[:, :C_out]


def _reference(x, w, b, gamma, beta):
    # Mirror the kernel's bf16 MXU inputs (f32 accumulation), keep the bias to
    # validate that BN cancels it, and use the two-pass variance.
    xb = x.astype(jnp.bfloat16).astype(jnp.float32)
    wb = w.astype(jnp.bfloat16).astype(jnp.float32)
    y = xb @ wb.T + b
    mean = jnp.mean(y, axis=0, keepdims=True)
    var = jnp.mean((y - mean) ** 2, axis=0, keepdims=True)  # biased, like BN training
    y_hat = (y - mean) / jnp.sqrt(var + BN_EPS)
    return jnp.maximum(y_hat * gamma + beta, 0.0)


if __name__ == "__main__":
    key = jax.random.PRNGKey(0)
    N, C_in, C_out = 8, 32, 64

    kx, kw, kb = jax.random.split(key, 3)
    x = jax.random.normal(kx, (N, C_in), dtype=jnp.float32)

    # Deterministic parameter init (PyTorch-like uniform bounds for Linear).
    bound = 1.0 / jnp.sqrt(jnp.float32(C_in))
    w = jax.random.uniform(kw, (C_out, C_in), jnp.float32, -bound, bound)
    b = jax.random.uniform(kb, (C_out,), jnp.float32, -bound, bound)
    gamma = jnp.ones((C_out,), jnp.float32)   # BN weight default init
    beta = jnp.zeros((C_out,), jnp.float32)   # BN bias default init

    out = basic_fc_bn(x, w, b, gamma, beta)
    jax.block_until_ready(out)

    ref = _reference(x, w, b, gamma, beta)
    assert out.shape == (N, C_out), f"bad shape {out.shape}"
    assert jnp.allclose(out, ref, atol=2e-3, rtol=2e-3), "mismatch vs reference"
    print("KERNEL_OK")
</pallas_src>

<mosaic_0001>
module attributes {stable_mosaic.version = 11 : i64} {
  func.func @fc_bn_relu_kernel(%arg0: i32, %arg1: i32, %arg2: memref<8x128xbf16, #tpu.memory_space<vmem>>, %arg3: memref<128x128xbf16, #tpu.memory_space<vmem>>, %arg4: memref<2x128xf32, #tpu.memory_space<vmem>>, %arg5: memref<8x128xf32, #tpu.memory_space<vmem>>) attributes {dimension_semantics = [#tpu.dimension_semantics<parallel>, #tpu.dimension_semantics<arbitrary>], iteration_bounds = array<i64: 1, 1>, scalar_prefetch = 0 : i64, scratch_operands = 0 : i64, tpu.core_type = #tpu.core_type<tc>, window_params = [{transform_indices = @transform_0, window_bounds = array<i64: 8, 128>}, {transform_indices = @transform_1, window_bounds = array<i64: 128, 128>}, {transform_indices = @transform_2, window_bounds = array<i64: 2, 128>}, {transform_indices = @transform_3, window_bounds = array<i64: 8, 128>}]} {
    %c0_i32 = arith.constant 0 : i32
    %0 = arith.cmpi eq, %arg1, %c0_i32 : i32
    %1 = arith.extui %0 : i1 to i32
    %c0_i32_0 = arith.constant 0 : i32
    %2 = arith.cmpi ne, %1, %c0_i32_0 : i32
    scf.if %2 {
      %cst_10 = arith.constant 0.000000e+00 : f32
      %12 = vector.broadcast %cst_10 : f32 to vector<8x128xf32>
      %c0_11 = arith.constant 0 : index
      %c0_12 = arith.constant 0 : index
      %13 = vector.load %arg5[%c0_11, %c0_12] : memref<8x128xf32, #tpu.memory_space<vmem>>, vector<8x128xf32>
      tpu.vector_store %arg5[%c0_11, %c0_12], %12 {strides = array<i32>} : memref<8x128xf32, #tpu.memory_space<vmem>>, vector<8x128xf32>,
    } else {
    }
    %c0 = arith.constant 0 : index
    %c0_1 = arith.constant 0 : index
    %3 = vector.load %arg5[%c0, %c0_1] : memref<8x128xf32, #tpu.memory_space<vmem>>, vector<8x128xf32>
    %c0_2 = arith.constant 0 : index
    %c0_3 = arith.constant 0 : index
    %4 = vector.load %arg2[%c0_2, %c0_3] : memref<8x128xbf16, #tpu.memory_space<vmem>>, vector<8x128xbf16>
    %c0_4 = arith.constant 0 : index
    %c0_5 = arith.constant 0 : index
    %5 = vector.load %arg3[%c0_4, %c0_5] : memref<128x128xbf16, #tpu.memory_space<vmem>>, vector<128x128xbf16>
    %cst = arith.constant dense<0.000000e+00> : vector<8x128xf32>
    %6 = tpu.matmul %4, %5, %cst {dimension_numbers = #tpu.dot_dimension_numbers<[1], [0], [0], [1], [0, 0, 1, 1], [], []>} : vector<8x128xbf16>, vector<128x128xbf16>, vector<8x128xf32> -> vector<8x128xf32>
    %7 = arith.addf %3, %6 : vector<8x128xf32>
    %c0_6 = arith.constant 0 : index
    %c0_7 = arith.constant 0 : index
    %8 = vector.load %arg5[%c0_6, %c0_7] : memref<8x128xf32, #tpu.memory_space<vmem>>, vector<8x128xf32>
    tpu.vector_store %arg5[%c0_6, %c0_7], %7 {strides = array<i32>} : memref<8x128xf32, #tpu.memory_space<vmem>>, vector<8x128xf32>,
    %c0_i32_8 = arith.constant 0 : i32
    %9 = arith.cmpi eq, %arg1, %c0_i32_8 : i32
    %10 = arith.extui %9 : i1 to i32
    %c0_i32_9 = arith.constant 0 : i32
    %11 = arith.cmpi ne, %10, %c0_i32_9 : i32
    scf.if %11 {
      %c0_10 = arith.constant 0 : index
      %c0_11 = arith.constant 0 : index
      %12 = vector.load %arg5[%c0_10, %c0_11] : memref<8x128xf32, #tpu.memory_space<vmem>>, vector<8x128xf32>
      %cst_12 = arith.constant dense<0.000000e+00> : vector<128xf32>
      %13 = vector.multi_reduction <add>, %12, %cst_12 [0] : vector<8x128xf32> to vector<128xf32>
      %14 = vector.shape_cast %13 : vector<128xf32> to vector<1x128xf32>
      %15 = arith.mulf %12, %12 : vector<8x128xf32>
      %cst_13 = arith.constant dense<0.000000e+00> : vector<128xf32>
      %16 = vector.multi_reduction <add>, %15, %cst_13 [0] : vector<8x128xf32> to vector<128xf32>
      %17 = vector.shape_cast %16 : vector<128xf32> to vector<1x128xf32>
      %cst_14 = arith.constant 1.250000e-01 : f32
      %18 = vector.broadcast %cst_14 : f32 to vector<1x128xf32>
      %19 = arith.mulf %14, %18 : vector<1x128xf32>
      %cst_15 = arith.constant 1.250000e-01 : f32
      %20 = vector.broadcast %cst_15 : f32 to vector<1x128xf32>
      %21 = arith.mulf %17, %20 : vector<1x128xf32>
      %22 = arith.mulf %19, %19 : vector<1x128xf32>
      %23 = arith.subf %21, %22 : vector<1x128xf32>
      %cst_16 = arith.constant 0.000000e+00 : f32
      %24 = vector.broadcast %cst_16 : f32 to vector<1x128xf32>
      %25 = arith.maximumf %23, %24 : vector<1x128xf32>
      %c0_17 = arith.constant 0 : index
      %c0_18 = arith.constant 0 : index
      %26 = vector.load %arg4[%c0_17, %c0_18] : memref<2x128xf32, #tpu.memory_space<vmem>>, vector<1x128xf32>
      %c1 = arith.constant 1 : index
      %c0_19 = arith.constant 0 : index
      %27 = vector.load %arg4[%c1, %c0_19] : memref<2x128xf32, #tpu.memory_space<vmem>>, vector<1x128xf32>
      %cst_20 = arith.constant 1.000000e-03 : f32
      %28 = vector.broadcast %cst_20 : f32 to vector<1x128xf32>
      %29 = arith.addf %25, %28 : vector<1x128xf32>
      %30 = math.rsqrt %29 : vector<1x128xf32>
      %31 = arith.mulf %26, %30 : vector<1x128xf32>
      %32 = arith.mulf %19, %31 : vector<1x128xf32>
      %33 = arith.subf %27, %32 : vector<1x128xf32>
      %34 = vector.broadcast %31 : vector<1x128xf32> to vector<8x128xf32>
      %35 = arith.mulf %12, %34 : vector<8x128xf32>
      %36 = vector.broadcast %33 : vector<1x128xf32> to vector<8x128xf32>
      %37 = arith.addf %35, %36 : vector<8x128xf32>
      %cst_21 = arith.constant 0.000000e+00 : f32
      %38 = vector.broadcast %cst_21 : f32 to vector<8x128xf32>
      %39 = arith.maximumf %37, %38 : vector<8x128xf32>
      %c0_22 = arith.constant 0 : index
      %c0_23 = arith.constant 0 : index
      %40 = vector.load %arg5[%c0_22, %c0_23] : memref<8x128xf32, #tpu.memory_space<vmem>>, vector<8x128xf32>
      tpu.vector_store %arg5[%c0_22, %c0_23], %39 {strides = array<i32>} : memref<8x128xf32, #tpu.memory_space<vmem>>, vector<8x128xf32>,
    } else {
    }
    return
  }
  func.func @transform_0(%arg0: i32, %arg1: i32) -> (i32, i32) {
    %c0_i32 = arith.constant 0 : i32
    %c0_i32_0 = arith.constant 0 : i32
    return %c0_i32, %arg1 : i32, i32
  }
  func.func @transform_1(%arg0: i32, %arg1: i32) -> (i32, i32) {
    %c0_i32 = arith.constant 0 : i32
    return %arg1, %arg0 : i32, i32
  }
  func.func @transform_2(%arg0: i32, %arg1: i32) -> (i32, i32) {
    %c0_i32 = arith.constant 0 : i32
    %c0_i32_0 = arith.constant 0 : i32
    return %c0_i32, %arg0 : i32, i32
  }
  func.func @transform_3(%arg0: i32, %arg1: i32) -> (i32, i32) {
    %c0_i32 = arith.constant 0 : i32
    %c0_i32_0 = arith.constant 0 : i32
    return %c0_i32, %arg0 : i32, i32
  }
}

</mosaic_0001>

<bundles_post_ra>
// kernel: tpu_custom_call.1
= control target key start
LH: loop header
LB: loop body
LE: loop exit
PB: predicated region body
PF: predicated region fallthrough
CT: control target
= control target key end

     0   :  { %8 = vsyncpa [#allocation3], 0  ;;  %s395_s0 = inlined_call_operand.hbm [shape: bf16[8,128], index: 0, kind: input, shape index: {}]   ;;  %s396_s1 = inlined_call_operand.hbm [shape: bf16[128,128], index: 1, kind: input, shape index: {}]   ;;  %s397_s2 = inlined_call_operand.hbm [shape: f32[2,128], index: 2, kind: input, shape index: {}]   ;;  %s398_s3 = inlined_call_operand.hbm [shape: f32[8,128], index: 3, kind: output, shape index: {}]  }
   0x1   :  { %9 = vsyncpa [#allocation6], 0  ;;  %s26_s14 = sshll.u32 %s396_s1, 4  ;;  %s27_s14 = int_to_ptr.hbm [resolvable:$true] %s26_s14 }
   0x2   :  { %10 = vsyncpa [#allocation4], 0  ;;  %s357_s15 = smov [#allocation5]   ;;  %s16_s19 = sshll.u32 %s395_s0, 4  ;;  %s17_s19 = int_to_ptr.hbm [resolvable:$true] %s16_s19 }
   0x3   :  { %s28_s16 = sshll.u32 %s357_s15, 4  ;;  %s358_s20 = smov 64   ;;  %s29_s16 = int_to_ptr.vmem [resolvable:$true] %s28_s16 }
   0x4   :  { %s359_s21 = smov 4   ;;  %s360_s22 = smov [#allocation2]  }
   0x5   :  { %34 = dma.hbm_to_vmem [thread:$0]  %s27_s14, 1024, %s29_s16, [#allocation6], %s358_s20, %s358_s20, %s359_s21  }
   0x6   :  { %s18_s23 = sshll.u32 %s360_s22, 4  ;;  %s40_s26 = sshll.u32 %s397_s2, 4  ;;  %s19_s23 = int_to_ptr.vmem [resolvable:$true] %s18_s23  ;;  %s41_s26 = int_to_ptr.hbm [resolvable:$true] %s40_s26 }
   0x7   :  { %21 = dma.hbm_to_vmem [thread:$0]  %s17_s19, 64, %s19_s23, [#allocation3]  }
   0x8   :  { %s361_s1 = smov [#allocation7]  }
   0x9   :  { %s42_s27 = sshll.u32 %s361_s1, 4  ;;  %s43_s27 = int_to_ptr.vmem [resolvable:$true] %s42_s27 }
   0xa   :  { %45 = dma.hbm_to_vmem [thread:$0]  %s41_s26, 32, %s43_s27, [#allocation6]  }
   0xb   :  { %351 = dma.done.wait [#allocation3], 64  }
   0xc   :  { %352 = vsyncadd [#allocation3], 4294967232 }
   0xd   :  { %353 = dma.done.wait [#allocation6], 1056  }
   0xe   :  { %354 = vsyncadd [#allocation6], 4294966240  ;;  %v245_v0 = vld [vmem:[#allocation5 + $0x38] sm:$0xff]  ;;  %v244_v1 = vld [vmem:[#allocation5 + $0x30] sm:$0xff]  ;;  %s362_s0 = smov [#allocation8]   ;;  %s195_s30 = sshll.u32 %s398_s3, 4  ;;  %s196_s30 = int_to_ptr.hbm [resolvable:$true] %s195_s30 }
   0xf   :  { %129 = vmatpush.bf16.msra.mxu0 %v245_v0  ;;  %v243_v2 = vld [vmem:[#allocation5 + $0x28] sm:$0xff]  ;;  %v242_v3 = vld [vmem:[#allocation5 + $0x20] sm:$0xff]  ;;  %v241_v4 = vld [vmem:[#allocation5 + $0x18] sm:$0xff]  ;;  %s193_s2 = sshll.u32 %s362_s0, 4  ;;  %s194_s2 = int_to_ptr.vmem [resolvable:$true] %s193_s2 }
  0x10   :  { %v240_v5 = vld [vmem:[#allocation5 + $0x10] sm:$0xff]  ;;  %v239_v6 = vld [vmem:[#allocation5 + $0x8] sm:$0xff]  ;;  %v238_v7 = vld [vmem:[#allocation5] sm:$0xff] }
  0x11   :  { %v64_v8 = vld [vmem:[#allocation2] sm:$0xf]  ;;  %v166_v35 = vld [vmem:[#allocation7] sm:$0x1]  ;;  %v167_v39 = vld [vmem:[#allocation7 + $0x1] sm:$0x1] }
  0x13   :  { %130 = vmatpush.bf16.msra.mxu0 %v244_v1 }
  0x17   :  { %131 = vmatpush.bf16.msra.mxu0 %v243_v2 }
  0x1b   :  { %132 = vmatpush.bf16.msra.mxu0 %v242_v3 }
  0x1f   :  { %133 = vmatpush.bf16.msra.mxu0 %v241_v4 }
  0x23   :  { %134 = vmatpush.bf16.msra.mxu0 %v240_v5 }
  0x27   :  { %135 = vmatpush.bf16.msra.mxu0 %v239_v6 }
  0x2b   :  { %136 = vmatpush.bf16.msra.mxu0 %v238_v7 }
  0x2e   :  { %137 = vmatmul.bf16.vlgmr.msra.gmra.mxu0 %v64_v8 }
  0xab   :  { %v138_v9 = vpop.f32.mrf.mxu0 }
  0xac   :  { %v148_v10 = vrot.slane %v138_v9, 4  ;;  %v154_v11 = vmul.f32 %v138_v9, %v138_v9 }
  0xae   :  { %v149_v12 = vadd.f32 %v148_v10, %v138_v9  ;;  %v155_v13 = vrot.slane %v154_v11, 4 }
  0xb0   :  { %v150_v14 = vrot.slane %v149_v12, 2  ;;  %v156_v15 = vadd.f32 %v155_v13, %v154_v11 }
  0xb2   :  { %v151_v17 = vadd.f32 %v150_v14, %v149_v12  ;;  %v157_v18 = vrot.slane %v156_v15, 2 }
  0xb3   :  { %v140_v16 = vpop.f32.mrf.mxu0 }
  0xb4   :  { %v152_v19 = vrot.slane %v151_v17, 1  ;;  %v158_v20 = vadd.f32 %v157_v18, %v156_v15 }
  0xb6   :  { %v153_v21 = vadd.f32 %v152_v19, %v151_v17  ;;  %v159_v22 = vrot.slane %v158_v20, 1 }
  0xb8   :  { %v160_v23 = vadd.f32 %v159_v22, %v158_v20  ;;  %v161_v24 = vmul.f32 0.125, %v153_v21 }
  0xba   :  { %v162_v25 = vmul.f32 0.125, %v160_v23  ;;  %v163_v26 = vmul.f32 %v161_v24, %v161_v24 }
  0xbc   :  { %v164_v27 = vsub.f32 %v162_v25, %v163_v26 }
  0xbe   :  { %v165_v28 = vmax.f32 %v164_v27, 0.0 }
  0xc0   :  { %v168_v29 = vadd.f32 0.001, %v165_v28 }
  0xc2   :  { %253 = vrsqrt.f32 %v168_v29  ;;  %vm175_vm1 = vweird.f32 %v168_v29 }
  0xc8   :  { %v254_v30 = vpop.eup %253 }
  0xc9   :  { %v170_v31 = vmul.f32 %v254_v30, %v168_v29  ;;  %vm176_vm0 = vweird.f32 %v254_v30 }
  0xca   :  { %vm177_vm2 = vmor %vm175_vm1, %vm176_vm0 }
  0xcb   :  { %v171_v32 = vmul.f32 %v254_v30, %v170_v31 }
  0xcd   :  { %v172_v33 = vmul.f32 0.5, %v171_v32 }
  0xcf   :  { %v173_v34 = vsub.f32 1.5, %v172_v33 }
  0xd1   :  { %v174_v36 = vmul.f32 %v254_v30, %v173_v34 }
  0xd3   :  { %v178_v37 = vsel %vm177_vm2, %v254_v30, %v174_v36 }
  0xd4   :  { %v179_v38 = vmul.f32 %v178_v37, %v166_v35 }
  0xd6   :  { %v180_v40 = vmul.f32 %v179_v38, %v161_v24  ;;  %v182_v41 = vperm.slane %v179_v38, 0 }
  0xd8   :  { %v181_v42 = vsub.f32 %v167_v39, %v180_v40  ;;  %v183_v43 = vmul.f32 %v182_v41, %v138_v9 }
  0xda   :  { %v184_v44 = vperm.slane %v181_v42, 0 }
  0xdc   :  { %v185_v45 = vadd.f32 %v184_v44, %v183_v43 }
  0xde   :  { %v186_v46 = vmax.f32 %v185_v45, 0.0 }
  0xe0   :  { %187 = vst [vmem:[#allocation8] sm:$0xff] %v186_v46 }
  0xe1   :  { %198 = dma.vmem_to_hbm [thread:$0]  %s194_s2, 128, %s196_s30, [#allocation4]  }
  0xe2   :  { %355 = dma.done.wait [#allocation4], 128  }
  0xe3   :  { %356 = vsyncadd [#allocation4], 4294967168 }
  0xe4   :  { %203 = vsyncpa [#allocation3], 1 }
  0xe5   :  { %204 = vsyncpa [#allocation6], 1 }
  0xe6   :  { %205 = vsyncpa [#allocation4], 1 }

</bundles_post_ra>
